<compile_context>
chip_gen: v5e
topology: v5e:2x2
jax: 0.10.0
libtpu: 0.0.40
codegen_flags: <defaults>
</compile_context>

<pallas_src>
import functools

import jax
import jax.numpy as jnp
from jax.experimental import pallas as pl
from jax.experimental.pallas import tpu as pltpu


def _vmem_gather_kernel(ids_ref, w_ref, out_ref):
    """Small-table path: table resident in VMEM, on-chip row copies.

    ids_ref: (n_pad,) int32 flattened token ids            [SMEM, whole array]
    w_ref:   (V+1, E) embedding table                       [VMEM, resident]
    out_ref: (tile, E) gathered embeddings                  [VMEM output block]
    """
    tile = out_ref.shape[0]
    base = pl.program_id(0) * tile

    def copy_row(t, carry):
        row = ids_ref[base + t]
        out_ref[pl.ds(t, 1), :] = w_ref[pl.ds(row, 1), :]
        return carry

    # TODO(synk): if Mosaic's dynamic_gather lowering covers this table shape,
    # a single jnp.take(w_ref[...], ids, axis=0) would vectorize this loop.
    jax.lax.fori_loop(0, tile, copy_row, 0, unroll=8)


def _hbm_gather_kernel(ids_ref, w_hbm, out_ref, sem):
    """Large-table path: per-row DMA gather, HBM table -> VMEM output block.

    ids_ref: (n_pad,) int32 flattened token ids            [SMEM, whole array]
    w_hbm:   (V+1, E) embedding table                       [HBM / pl.ANY]
    out_ref: (tile, E) gathered embeddings                  [VMEM output block]
    sem:     one byte-counting DMA semaphore shared by all row copies
    """
    tile = out_ref.shape[0]
    base = pl.program_id(0) * tile

    def issue(t, carry):
        row = ids_ref[base + t]
        pltpu.make_async_copy(
            w_hbm.at[pl.ds(row, 1), :], out_ref.at[pl.ds(t, 1), :], sem
        ).start()
        return carry

    # Unrolled issue loop: descriptor writes go through the single vector-misc
    # slot, so let the scheduler interleave id loads / address math across
    # iterations.
    jax.lax.fori_loop(0, tile, issue, 0, unroll=8)

    # Single drain.  The DMA semaphore counts bytes; the `tile` outstanding
    # (1, E) row copies total exactly tile * E * itemsize bytes == the size of
    # the full output block, so one wait sized to out_ref drains them all.
    # (This descriptor is never started; wait() only uses the dst size + sem.)
    pltpu.make_async_copy(out_ref, out_ref, sem).wait()


def _round_up(x, m):
    return -(-x // m) * m


def _pick_tile(n_tok, emb, requested):
    """Tokens per grid step.

    Big enough to amortize the ~0.35 us per-step pipeline overhead, small
    enough that the double-buffered f32 output block stays <= ~8 MiB, and
    halved when that would leave a single-step grid so both v7x TensorCores
    get a share of the (parallel) grid.
    """
    bytes_per_tok = 2 * emb * 4                 # double-buffered f32 out row
    cap = max(8, ((8 << 20) // bytes_per_tok) // 8 * 8)
    tile = max(8, (min(int(requested), cap) // 8) * 8)
    n_ceil = _round_up(max(n_tok, 1), 8)
    if tile >= n_ceil:
        half = _round_up(max((n_tok + 1) // 2, 1), 8)
        tile = max(8, min(n_ceil, half))
    return tile


@functools.partial(jax.jit, static_argnames=("tile", "force_hbm"))
def word2vec_forward(data, weight, *, tile=1024, force_hbm=False):
    """Equivalent of _Word2Vec.forward(data) == ivectors(LongTensor(data)).

    data:   (B, S) integer token ids in [0, vocab_size]
    weight: (vocab_size + 1, E) f32 embedding table (row 0 = zero/padding row)
    returns (B, S, E) f32
    """
    B, S = data.shape
    V1, E = weight.shape
    n_tok = B * S

    tile = _pick_tile(n_tok, E, tile)
    num_tiles = pl.cdiv(n_tok, tile)
    n_pad = num_tiles * tile

    ids = data.reshape(-1).astype(jnp.int32)
    if n_pad != n_tok:
        # Padded slots point at row 0 (the zero row).  They are gathered into
        # the dead tail of the last VMEM block only; out_shape below is the
        # exact un-padded (n_tok, E), so the pipeline masks their writeback
        # and no post-kernel slice is needed.
        ids = jnp.concatenate([ids, jnp.zeros((n_pad - n_tok,), jnp.int32)])

    itemsize = weight.dtype.itemsize
    table_bytes = V1 * E * itemsize
    out_bufs_bytes = 2 * tile * E * itemsize      # double-buffered out block
    # Conservative budget that fits every generation (v7x has only 64 MiB of
    # physical VMEM, 32 MiB default scoped); count the table double-buffered.
    vmem_if_resident = 2 * table_bytes + out_bufs_bytes + (2 << 20)
    use_vmem_table = (not force_hbm) and vmem_if_resident <= (40 << 20)

    ids_spec = pl.BlockSpec(memory_space=pltpu.MemorySpace.SMEM)
    out_spec = pl.BlockSpec((tile, E), lambda i: (i, 0))

    if use_vmem_table:
        kernel = _vmem_gather_kernel
        w_spec = pl.BlockSpec((V1, E), lambda i: (0, 0))   # resident in VMEM
        scratch_shapes = []
        vmem_need = vmem_if_resident
    else:
        kernel = _hbm_gather_kernel
        w_spec = pl.BlockSpec(memory_space=pl.ANY)         # table stays in HBM
        scratch_shapes = [pltpu.SemaphoreType.DMA(())]
        vmem_need = out_bufs_bytes + (2 << 20)
        # TODO(synk): nn.Embedding raises on out-of-range ids; on this path an
        # id >= V+1 trips the DMA bounds check instead of a friendly error.
        # (Possible further wins: pad rows to 128 lanes on v5e for short-read
        # bandwidth; dedupe repeated Zipfian ids per tile to cut descriptors.)

    out = pl.pallas_call(
        kernel,
        out_shape=jax.ShapeDtypeStruct((n_tok, E), weight.dtype),
        grid=(num_tiles,),
        in_specs=[ids_spec, w_spec],
        out_specs=out_spec,
        scratch_shapes=scratch_shapes,
        compiler_params=pltpu.CompilerParams(
            dimension_semantics=("parallel",),     # megacore sharding on v7x
            vmem_limit_bytes=int(min(max(vmem_need, 16 << 20), 48 << 20)),
        ),
    )(ids, weight)

    return out.reshape(B, S, E)


def init_word2vec_weights(key, vocab_size, embedding_size):
    """Matches the module init: row 0 zeros, rest U(-0.5/E, 0.5/E)."""
    lim = 0.5 / embedding_size
    body = jax.random.uniform(
        key, (vocab_size, embedding_size), jnp.float32, minval=-lim, maxval=lim
    )
    return jnp.concatenate(
        [jnp.zeros((1, embedding_size), jnp.float32), body], axis=0
    )  # (vocab_size + 1, E)


if __name__ == "__main__":
    vocab_size = 50
    embedding_size = 32

    key = jax.random.PRNGKey(0)
    k_w, k_i1, k_i2, k_i3 = jax.random.split(key, 4)

    ivectors = init_word2vec_weights(k_w, vocab_size, embedding_size)

    # Case 1: B=2, S=8 -> 16 tokens; VMEM-resident table path, 2 grid steps.
    data1 = jax.random.randint(k_i1, (2, 8), 0, vocab_size + 1, dtype=jnp.int32)
    out1 = jax.block_until_ready(word2vec_forward(data1, ivectors))
    ref1 = ivectors[data1]
    assert out1.shape == (2, 8, embedding_size) and out1.dtype == jnp.float32
    assert jnp.array_equal(out1, ref1), "mismatch (VMEM path, case 1)"

    # Case 2: B=3, S=5 -> 15 tokens; exercises the padded partial last block.
    data2 = jax.random.randint(k_i2, (3, 5), 0, vocab_size + 1, dtype=jnp.int32)
    out2 = jax.block_until_ready(word2vec_forward(data2, ivectors))
    assert jnp.array_equal(out2, ivectors[data2]), "mismatch (VMEM path, case 2)"

    # Case 3: force the HBM per-row DMA gather path (used for large tables).
    data3 = jax.random.randint(k_i3, (4, 16), 0, vocab_size + 1, dtype=jnp.int32)
    out3 = jax.block_until_ready(
        word2vec_forward(data3, ivectors, force_hbm=True)
    )
    assert jnp.array_equal(out3, ivectors[data3]), "mismatch (HBM DMA path)"

    print("KERNEL_OK")
</pallas_src>

<mosaic_0001>
module attributes {stable_mosaic.version = 11 : i64} {
  func.func @_vmem_gather_kernel(%arg0: i32, %arg1: memref<16xi32, #tpu.memory_space<smem>>, %arg2: memref<51x32xf32, #tpu.memory_space<vmem>>, %arg3: memref<8x32xf32, #tpu.memory_space<vmem>>) attributes {dimension_semantics = [#tpu.dimension_semantics<parallel>], iteration_bounds = array<i64: 2>, scalar_prefetch = 0 : i64, scratch_operands = 0 : i64, tpu.core_type = #tpu.core_type<tc>, window_params = [{transform_indices = @transform_0, window_bounds = array<i64: 16>}, {pipeline_mode = #tpu.pipeline_mode<synchronous>, transform_indices = @transform_1, window_bounds = array<i64: 51, 32>}, {transform_indices = @transform_2, window_bounds = array<i64: 8, 32>}]} {
    %c8_i32 = arith.constant 8 : i32
    %0 = arith.muli %arg0, %c8_i32 : i32
    %c0_i32 = arith.constant 0 : i32
    %1 = arith.addi %0, %c0_i32 : i32
    %2 = arith.index_cast %1 : i32 to index
    %3 = memref.load %arg1[%2] : memref<16xi32, #tpu.memory_space<smem>>
    %4 = arith.index_cast %3 : i32 to index
    %c0 = arith.constant 0 : index
    %5 = vector.load %arg2[%4, %c0] : memref<51x32xf32, #tpu.memory_space<vmem>>, vector<1x32xf32>
    %6 = arith.index_cast %c0_i32 : i32 to index
    %c0_0 = arith.constant 0 : index
    %7 = vector.load %arg3[%6, %c0_0] : memref<8x32xf32, #tpu.memory_space<vmem>>, vector<1x32xf32>
    tpu.vector_store %arg3[%6, %c0_0], %5 {strides = array<i32>} : memref<8x32xf32, #tpu.memory_space<vmem>>, vector<1x32xf32>,
    %c1_i32 = arith.constant 1 : i32
    %8 = arith.addi %0, %c1_i32 : i32
    %9 = arith.index_cast %8 : i32 to index
    %10 = memref.load %arg1[%9] : memref<16xi32, #tpu.memory_space<smem>>
    %11 = arith.index_cast %10 : i32 to index
    %c0_1 = arith.constant 0 : index
    %12 = vector.load %arg2[%11, %c0_1] : memref<51x32xf32, #tpu.memory_space<vmem>>, vector<1x32xf32>
    %13 = arith.index_cast %c1_i32 : i32 to index
    %c0_2 = arith.constant 0 : index
    %14 = vector.load %arg3[%13, %c0_2] : memref<8x32xf32, #tpu.memory_space<vmem>>, vector<1x32xf32>
    tpu.vector_store %arg3[%13, %c0_2], %12 {strides = array<i32>} : memref<8x32xf32, #tpu.memory_space<vmem>>, vector<1x32xf32>,
    %c2_i32 = arith.constant 2 : i32
    %15 = arith.addi %0, %c2_i32 : i32
    %16 = arith.index_cast %15 : i32 to index
    %17 = memref.load %arg1[%16] : memref<16xi32, #tpu.memory_space<smem>>
    %18 = arith.index_cast %17 : i32 to index
    %c0_3 = arith.constant 0 : index
    %19 = vector.load %arg2[%18, %c0_3] : memref<51x32xf32, #tpu.memory_space<vmem>>, vector<1x32xf32>
    %20 = arith.index_cast %c2_i32 : i32 to index
    %c0_4 = arith.constant 0 : index
    %21 = vector.load %arg3[%20, %c0_4] : memref<8x32xf32, #tpu.memory_space<vmem>>, vector<1x32xf32>
    tpu.vector_store %arg3[%20, %c0_4], %19 {strides = array<i32>} : memref<8x32xf32, #tpu.memory_space<vmem>>, vector<1x32xf32>,
    %c3_i32 = arith.constant 3 : i32
    %22 = arith.addi %0, %c3_i32 : i32
    %23 = arith.index_cast %22 : i32 to index
    %24 = memref.load %arg1[%23] : memref<16xi32, #tpu.memory_space<smem>>
    %25 = arith.index_cast %24 : i32 to index
    %c0_5 = arith.constant 0 : index
    %26 = vector.load %arg2[%25, %c0_5] : memref<51x32xf32, #tpu.memory_space<vmem>>, vector<1x32xf32>
    %27 = arith.index_cast %c3_i32 : i32 to index
    %c0_6 = arith.constant 0 : index
    %28 = vector.load %arg3[%27, %c0_6] : memref<8x32xf32, #tpu.memory_space<vmem>>, vector<1x32xf32>
    tpu.vector_store %arg3[%27, %c0_6], %26 {strides = array<i32>} : memref<8x32xf32, #tpu.memory_space<vmem>>, vector<1x32xf32>,
    %c4_i32 = arith.constant 4 : i32
    %29 = arith.addi %0, %c4_i32 : i32
    %30 = arith.index_cast %29 : i32 to index
    %31 = memref.load %arg1[%30] : memref<16xi32, #tpu.memory_space<smem>>
    %32 = arith.index_cast %31 : i32 to index
    %c0_7 = arith.constant 0 : index
    %33 = vector.load %arg2[%32, %c0_7] : memref<51x32xf32, #tpu.memory_space<vmem>>, vector<1x32xf32>
    %34 = arith.index_cast %c4_i32 : i32 to index
    %c0_8 = arith.constant 0 : index
    %35 = vector.load %arg3[%34, %c0_8] : memref<8x32xf32, #tpu.memory_space<vmem>>, vector<1x32xf32>
    tpu.vector_store %arg3[%34, %c0_8], %33 {strides = array<i32>} : memref<8x32xf32, #tpu.memory_space<vmem>>, vector<1x32xf32>,
    %c5_i32 = arith.constant 5 : i32
    %36 = arith.addi %0, %c5_i32 : i32
    %37 = arith.index_cast %36 : i32 to index
    %38 = memref.load %arg1[%37] : memref<16xi32, #tpu.memory_space<smem>>
    %39 = arith.index_cast %38 : i32 to index
    %c0_9 = arith.constant 0 : index
    %40 = vector.load %arg2[%39, %c0_9] : memref<51x32xf32, #tpu.memory_space<vmem>>, vector<1x32xf32>
    %41 = arith.index_cast %c5_i32 : i32 to index
    %c0_10 = arith.constant 0 : index
    %42 = vector.load %arg3[%41, %c0_10] : memref<8x32xf32, #tpu.memory_space<vmem>>, vector<1x32xf32>
    tpu.vector_store %arg3[%41, %c0_10], %40 {strides = array<i32>} : memref<8x32xf32, #tpu.memory_space<vmem>>, vector<1x32xf32>,
    %c6_i32 = arith.constant 6 : i32
    %43 = arith.addi %0, %c6_i32 : i32
    %44 = arith.index_cast %43 : i32 to index
    %45 = memref.load %arg1[%44] : memref<16xi32, #tpu.memory_space<smem>>
    %46 = arith.index_cast %45 : i32 to index
    %c0_11 = arith.constant 0 : index
    %47 = vector.load %arg2[%46, %c0_11] : memref<51x32xf32, #tpu.memory_space<vmem>>, vector<1x32xf32>
    %48 = arith.index_cast %c6_i32 : i32 to index
    %c0_12 = arith.constant 0 : index
    %49 = vector.load %arg3[%48, %c0_12] : memref<8x32xf32, #tpu.memory_space<vmem>>, vector<1x32xf32>
    tpu.vector_store %arg3[%48, %c0_12], %47 {strides = array<i32>} : memref<8x32xf32, #tpu.memory_space<vmem>>, vector<1x32xf32>,
    %c7_i32 = arith.constant 7 : i32
    %50 = arith.addi %0, %c7_i32 : i32
    %51 = arith.index_cast %50 : i32 to index
    %52 = memref.load %arg1[%51] : memref<16xi32, #tpu.memory_space<smem>>
    %53 = arith.index_cast %52 : i32 to index
    %c0_13 = arith.constant 0 : index
    %54 = vector.load %arg2[%53, %c0_13] : memref<51x32xf32, #tpu.memory_space<vmem>>, vector<1x32xf32>
    %55 = arith.index_cast %c7_i32 : i32 to index
    %c0_14 = arith.constant 0 : index
    %56 = vector.load %arg3[%55, %c0_14] : memref<8x32xf32, #tpu.memory_space<vmem>>, vector<1x32xf32>
    tpu.vector_store %arg3[%55, %c0_14], %54 {strides = array<i32>} : memref<8x32xf32, #tpu.memory_space<vmem>>, vector<1x32xf32>,
    %c8_i32_15 = arith.constant 8 : i32
    return
  }
  func.func @transform_0(%arg0: i32) -> i32 {
    %c0_i32 = arith.constant 0 : i32
    %c0_i32_0 = arith.constant 0 : i32
    return %c0_i32 : i32
  }
  func.func @transform_1(%arg0: i32) -> (i32, i32) {
    %c0_i32 = arith.constant 0 : i32
    %c0_i32_0 = arith.constant 0 : i32
    %c0_i32_1 = arith.constant 0 : i32
    return %c0_i32, %c0_i32_0 : i32, i32
  }
  func.func @transform_2(%arg0: i32) -> (i32, i32) {
    %c0_i32 = arith.constant 0 : i32
    %c0_i32_0 = arith.constant 0 : i32
    return %arg0, %c0_i32 : i32, i32
  }
}

</mosaic_0001>

<bundles_post_ra>
// kernel: word2vec_forward.1
= control target key start
LH: loop header
LB: loop body
LE: loop exit
PB: predicated region body
PF: predicated region fallthrough
CT: control target
= control target key end

     0   :  { %s557_s0 = inlined_call_operand.vmem [shape: s32[16], index: 0, kind: input, shape index: {}]   ;;  %s558_s1 = inlined_call_operand.vmem [shape: f32[51,32], index: 1, kind: input, shape index: {}]   ;;  %s559_s2 = inlined_call_operand.hbm [shape: f32[16,32], index: 2, kind: output, shape index: {}]  }
   0x1   :  { %561 = sst [smem:[#allocation8_spill]] %s557_s0 }
   0x2   :  { %7 = vsyncpa [#allocation4], 0 }
   0x3   :  { %8 = vsyncpa [#allocation3], 0 }
   0x4   :  { %10 = vsyncpa [#allocation3 + $0x1], 0  ;;  %s420_s9 = smov 0   ;;  %s422_s10 = smov 0  }
   0x5   :  { %s424_s11 = smov 0   ;;  %s426_s12 = smov 0  }
   0x6 LB: > { %s259_s13 = sadd.s32 4294967295, %s402_s12   ;;  %s260_s14 = sadd.s32 4294967294, %s402_s12   ;;  %s402_s12 = sphi %s426_s12, %s569_s12   ;;  %s398_s11 = sphi %s424_s11, %s568_s11   ;;  %s394_s10 = sphi %s422_s10, %s567_s10   ;;  %s390_s9 = sphi %s420_s9, %s566_s9  }
   0x7   : > { %s443_s15 = sadd.s32 1, %s402_s12   ;;  %s65_s16 = sadd.s32 1, %s398_s11 }
   0x8   : > { %s62_s17 = ssub.s32 %s402_s12, %s443_s15  ;;  %p75_p0 = scmp.ne.s32.totalorder %s398_s11, %s394_s10 }
   0x9   : > { %p63_p1 = scmp.eq.s32.totalorder %s62_s17, 0  ;;  %p76_p2 = scmp.eq.s32.totalorder %s259_s13, 1 }
   0xa   : > { %p81_p3 = scmp.ne.s32.totalorder %s394_s10, %s390_s9  ;;  %p82_p4 = scmp.eq.s32.totalorder %s260_s14, 1 }
   0xb   : > { %s453_s18 = scalar_select %p63_p1, %s398_s11, %s65_s16  }
   0xc   : > { %p455_p5 = por %p76_p2, %p75_p0  ;;  %p459_p6 = por %p82_p4, %p81_p3 }
   0xd   : > { %p261_p7 = scmp.ge.s32.totalorder %s402_s12, 1  ;;  %p89_p8 = scmp.lt.s32.totalorder %s402_s12, 3 }
   0xe   : > { %p285_p9 = scmp.eq.s32.totalorder %s259_s13, 0  ;;  %s564_s0 = sld [smem:[#allocation8_spill]] }
   0xf   : > { %p90_p10 = pnand %p261_p7, %p89_p8  ;;  %s404_s24 = smov [#allocation2]  }
  0x11   : > { %p277_p11 = pneg %p90_p10  ;;  %117 = sbr.rel (%p90_p10) target bundleno = 52 (0x34), region = 28 }
  0x13   : > { %p278_p12 = pnand %p285_p9, %p277_p11 }
  0x14   : > { %s101_s23 = sshll.u32 %s564_s0, 4  ;;  %s102_s23 = int_to_ptr.vmem [resolvable:$true] %s101_s23 }
  0x15   : > { %280 = dma.vmem_to_smem (!%p278_p12), %s102_s23, 16, %s404_s24, [#allocation4]  }
  0x16   : > { %381 = dma.done.wait (%p285_p9), [#allocation4], 16  }
  0x17   : > { %383 = vsyncadd (%p285_p9), [#allocation4], 4294967280 }
  0x18   : > { %124 = sfence }
  0x19   : > { %s560_s25 = sand.u32 1, %s394_s10   ;;  %s469_s26 = sshll.u32 %s259_s13, 3  ;;  %vm140_vm0 = vcmask 253952  }
  0x1a   : > { %s265_s27 = sshll.u32 %s560_s25, 3  ;;  %s137_s28 = sld [smem:[#allocation2 + %s469_s26]] }
  0x1b   : > { %s142_s29 = sadd.s32 1, %s469_s26  ;;  %s147_s30 = sadd.s32 2, %s469_s26 }
  0x1c   : > { %s143_s3 = sld [smem:[#allocation2 + %s142_s29]]  ;;  %s152_s4 = sadd.s32 3, %s469_s26 }
  0x1d   : > { %s148_s5 = sld [smem:[#allocation2 + %s147_s30]]  ;;  %s157_s6 = sadd.s32 4, %s469_s26 }
  0x1e   : > { %s153_s7 = sld [smem:[#allocation2 + %s152_s4]]  ;;  %s162_s8 = sadd.s32 5, %s469_s26 }
  0x1f   : > { %s158_s17 = sld [smem:[#allocation2 + %s157_s6]]  ;;  %s167_s22 = sadd.s32 6, %s469_s26 }
  0x20   : > { %s138_s16 = scalar_lea.vmem %s558_s1, %s137_s28  ;;  %s163_s21 = sld [smem:[#allocation2 + %s162_s8]] }
  0x21   : > { %v139_v0 = vld [vmem:[%s138_s16] sm:$0x1]  ;;  %s483_s23 = scalar_lea.vmem [#allocation5], %s265_s27  ;;  %s168_s24 = sld [smem:[#allocation2 + %s167_s22]] }
  0x22   : > { %141 = vst.msk [vmem:[%s483_s23] sm:$0x1] %vm140_vm0, %v139_v0  ;;  %s172_s29 = sadd.s32 7, %s469_s26  ;;  %s144_s13 = scalar_lea.vmem %s558_s1, %s143_s3 }
  0x23   : > { %s173_s28 = sld [smem:[#allocation2 + %s172_s29]]  ;;  %v145_v1 = vld [vmem:[%s144_s13] sm:$0x1]  ;;  %s149_s27 = scalar_lea.vmem %s558_s1, %s148_s5 }
  0x24   : > { %s188_s25 = scalar_lea.hbm %s559_s2, %s469_s26  ;;  %146 = vst.msk [vmem:[%s483_s23 + $0x1] sm:$0x1] %vm140_vm0, %v145_v1  ;;  %v150_v2 = vld [vmem:[%s149_s27] sm:$0x1]  ;;  %s154_s30 = scalar_lea.vmem %s558_s1, %s153_s7 }
  0x25   : > { %s190_s3 = sshll.u32 %s483_s23, 4  ;;  %151 = vst.msk [vmem:[%s483_s23 + $0x2] sm:$0x1] %vm140_vm0, %v150_v2  ;;  %v155_v3 = vld [vmem:[%s154_s30] sm:$0x1]  ;;  %s159_s5 = scalar_lea.vmem %s558_s1, %s158_s17  ;;  %s191_s3 = int_to_ptr.vmem [resolvable:$true] %s190_s3 }
  0x26   : > { %156 = vst.msk [vmem:[%s483_s23 + $0x3] sm:$0x1] %vm140_vm0, %v155_v3  ;;  %v160_v4 = vld [vmem:[%s159_s5] sm:$0x1]  ;;  %s164_s6 = scalar_lea.vmem %s558_s1, %s163_s21  ;;  %s192_s0 = sshll.u32 %s188_s25, 4  ;;  %s193_s0 = int_to_ptr.hbm [resolvable:$true] %s192_s0 }
  0x27   : > { %161 = vst.msk [vmem:[%s483_s23 + $0x4] sm:$0x1] %vm140_vm0, %v160_v4  ;;  %v165_v5 = vld [vmem:[%s164_s6] sm:$0x1]  ;;  %s169_s27 = scalar_lea.vmem %s558_s1, %s168_s24  ;;  %s565_s25 = sand.u32 1, %s394_s10  }
  0x28   : > { %166 = vst.msk [vmem:[%s483_s23 + $0x5] sm:$0x1] %vm140_vm0, %v165_v5  ;;  %v170_v6 = vld [vmem:[%s169_s27] sm:$0x1]  ;;  %s178_s21 = scalar_lea.sflag [#allocation3], %s565_s25  ;;  %s350_s22 = sshra.s32 %s193_s0, 4  ;;  %s351_s22 = int_to_ptr.hbm [resolvable:$true] %s350_s22 }
  0x29   : > { %s174_s16 = scalar_lea.vmem %s558_s1, %s173_s28  ;;  %171 = vst.msk [vmem:[%s483_s23 + $0x6] sm:$0x1] %vm140_vm0, %v170_v6  ;;  %s352_s30 = scalar_lea.hbm %s351_s22, 8 }
  0x2a   : > { %v175_v7 = vld [vmem:[%s174_s16] sm:$0x1]  ;;  %p353_p13 = scmp.ne.s32.totalorder %s351_s22, %s352_s30  ;;  %s356_s4 = scalar_lea.hbm %s559_s2, 16 }
  0x2b   : > { %176 = vst.msk [vmem:[%s483_s23 + $0x7] sm:$0x1] %vm140_vm0, %v175_v7  ;;  %p357_p2 = scmp.lt.s32.totalorder %s351_s22, %s559_s2  ;;  %p358_p3 = scmp.lt.s32.totalorder %s356_s4, %s352_s30 }
  0x2c   : > { %p354_p0 = pnand %p353_p13, %p455_p5 }
  0x2d   : > { %p359_p4 = por %p358_p3, %p357_p2 }
  0x2e   : > { %p355_p1 = pneg %p354_p0 }
  0x30   : > { %p360_p7 = pnand %p359_p4, %p355_p1 }
  0x32   : > { %363 = shalt.err (!%p360_p7)
}
  0x33   : > { %275 = dma.vmem_to_hbm [thread:$0]  (%p455_p5), %s191_s3, 128, %s193_s0, %s178_s21  }
  0x34 PF: > { %p287_p8 = scmp.ge.s32.totalorder %s402_s12, 2  ;;  %s204_s23 = sand.u32 1, %s390_s9  }
  0x35   : > { %s205_s26 = scalar_lea.sflag [#allocation3], %s204_s23 }
  0x36   : > { %p282_p9 = pnand %p287_p8, %p459_p6 }
  0x38   : > { %p283_p10 = pneg %p282_p9 }
  0x3a   : > { %385 = dma.done.wait (%p283_p10), %s205_s26, 128  }
  0x3b   : > { %387 = vsyncadd (%p283_p10), %s205_s26, 4294967168  ;;  %p13_p11 = scmp.ge.s32.totalorder %s443_s15, 4   ;;  %s566_s9 = smov %s394_s10 }
  0x3c   : > { %s567_s10 = smov %s398_s11  ;;  %s568_s11 = smov %s453_s18 }
  0x3d   : > { %s569_s12 = smov %s443_s15  ;;  %15 = sbr.rel (!%p13_p11) target bundleno = 6 (0x6), region = 73 }
  0x42   :  { %211 = vsyncpa [#allocation3], 1 }
  0x43   :  { %213 = vsyncpa [#allocation3 + $0x1], 1 }
  0x44   :  { %214 = vsyncpa [#allocation4], 1 }
  0x45   :  { %216 = vsyncpa [#allocation4 + $0x1], 1 }

</bundles_post_ra>
